<compile_context>
chip_gen: v6e
topology: v6e:2x2x1
jax: 0.10.0
libtpu: 0.0.40
codegen_flags: <defaults>
</compile_context>

<pallas_src>
import functools

import jax
import jax.numpy as jnp
from jax.experimental import pallas as pl
from jax.experimental.pallas import tpu as pltpu


def _pick_tail_dtype():
    """bf16 elementwise tails on chips with a bf16 VALU (v6e/v7x), f32 otherwise."""
    try:
        kind = jax.devices()[0].device_kind.lower()
    except Exception:
        return jnp.float32
    for old in ("v2", "v3", "v4", "v5"):
        if old in kind:
            return jnp.float32
    return jnp.bfloat16


def _color_attention_kernel(
    x_ref,                 # (C_in, tile) f32
    w1t_ref, b1_ref,       # (128, C_in) bf16, (128, 1) f32   color_extract conv1 (+BN1)
    w2t_ref, b2_ref,       # (64, 128) bf16, (64, 1) f32      color_extract conv2 (+BN2)
    wmid_ref, bmid_ref,    # (M_pad, 64) bf16, (M_pad, 1) f32 fused [red|yellow hidden ; reconstruct]
    wry2_ref, bry2_ref,    # (8, 64) bf16, (8, 1) f32         fused red/yellow 1-ch projections
    enh_ref,               # (C_in, tile) f32
    attn_ref,              # (2, tile) f32: row 0 = red, row 1 = yellow
    *, c_in, tail_dtype,
):
    tail = tail_dtype
    x = x_ref[...]                                                    # (C_in, T) f32
    x_bf = x.astype(jnp.bfloat16)

    # color_extract conv1 (+folded BN1) + ReLU.  Tiny-K matmul on the MXU
    # (Mosaic pads K = C_in); bias + ReLU tail in `tail` dtype, one expression.
    h1 = jnp.maximum(
        jnp.dot(w1t_ref[...], x_bf, preferred_element_type=jnp.float32).astype(tail)
        + b1_ref[...].astype(tail), 0).astype(jnp.bfloat16)           # (128, T)

    # color_extract conv2 (+folded BN2) + ReLU.
    color = jnp.maximum(
        jnp.dot(w2t_ref[...], h1, preferred_element_type=jnp.float32).astype(tail)
        + b2_ref[...].astype(tail), 0).astype(jnp.bfloat16)           # (64, T)

    # One MXU dot for [red hidden | yellow hidden | reconstruct] over `color`.
    mid = jnp.dot(wmid_ref[...], color,
                  preferred_element_type=jnp.float32)                 # (M_pad, T) f32
    ry = jnp.maximum(
        mid[0:64, :].astype(tail) + bmid_ref[0:64, :].astype(tail), 0
    ).astype(jnp.bfloat16)                                            # (64, T)
    recon = mid[64:64 + c_in, :] + bmid_ref[64:64 + c_in, :]          # (C_in, T) f32, no ReLU

    # Fused red/yellow 1-channel projections (block-diagonal weights; rows 0/1
    # live, 2..7 zero padding).  Sigmoid only on the 2 live rows.
    logits = (jnp.dot(wry2_ref[...], ry, preferred_element_type=jnp.float32)
              + bry2_ref[...])                                        # (8, T) f32
    attn = jax.nn.sigmoid(logits[0:2, :])                             # (2, T) f32
    red = attn[0:1, :]
    yel = attn[1:2, :]

    # reconstruct * (red + yellow), then gate the input (all f32 tail).
    enh_ref[...] = (x * (recon * (red + yel))).astype(enh_ref.dtype)
    attn_ref[...] = attn.astype(attn_ref.dtype)


def enhanced_color_attention(x_nchw, kernel_params, *, tile_t=2048, tail_dtype=None):
    """x_nchw: (N, C_in, H, W) f32. Returns (enhanced, red_w, yellow_w) in NCHW."""
    if tail_dtype is None:
        tail_dtype = _pick_tail_dtype()

    n, c_in, h, w = x_nchw.shape
    hw = h * w

    # Keep the native contiguous layout: (N, C, H*W).  No transposes, so no
    # extra full-tensor HBM round-trips outside the kernel.
    x3 = x_nchw.reshape(n, c_in, hw)

    # Lane tile over the pixel axis; pad H*W up to a tile multiple.
    tile_t = max(128, (tile_t // 128) * 128)
    tile_hw = min(tile_t, pl.cdiv(hw, 128) * 128)
    num_tiles = pl.cdiv(hw, tile_hw)
    hw_pad = num_tiles * tile_hw
    if hw_pad != hw:
        x3 = jnp.pad(x3, ((0, 0), (0, 0), (0, hw_pad - hw)))

    def tiled_spec(rows):
        return pl.BlockSpec((pl.Squeezed(), rows, tile_hw), lambda b, i: (b, 0, i))

    def const_spec(arr):
        zeros = (0,) * arr.ndim
        return pl.BlockSpec(arr.shape, lambda b, i: zeros)

    in_specs = [tiled_spec(c_in)] + [const_spec(p) for p in kernel_params]
    out_specs = (tiled_spec(c_in), tiled_spec(2))
    out_shape = (
        jax.ShapeDtypeStruct((n, c_in, hw_pad), x_nchw.dtype),
        jax.ShapeDtypeStruct((n, 2, hw_pad), jnp.float32),
    )

    kernel = functools.partial(_color_attention_kernel, c_in=c_in, tail_dtype=tail_dtype)

    enh3, attn3 = pl.pallas_call(
        kernel,
        out_shape=out_shape,
        grid_spec=pltpu.PrefetchScalarGridSpec(
            num_scalar_prefetch=0,
            grid=(n, num_tiles),          # batch axis keeps >= 2 parallel steps for 2-TC chips
            in_specs=in_specs,
            out_specs=out_specs,
        ),
        compiler_params=pltpu.CompilerParams(
            dimension_semantics=("parallel", "parallel"),
            vmem_limit_bytes=32 * 1024 * 1024,
        ),
    )(x3, *kernel_params)

    enh = enh3[:, :, :hw].reshape(n, c_in, h, w)
    red = attn3[:, 0:1, :hw].reshape(n, 1, h, w)
    yel = attn3[:, 1:2, :hw].reshape(n, 1, h, w)
    return enh, red, yel


def init_params(key, c_in):
    """Deterministic synthetic parameters in PyTorch-equivalent layout.

    1x1 conv weights (out, in, 1, 1) are stored as (in, out) matrices, biases
    as (1, out).  BatchNorm (eval mode: gamma=1, beta=0, mean=0, var=1,
    eps=1e-5) is folded into the preceding conv's weight/bias.
    """
    ks = jax.random.split(key, 14)
    eps = 1e-5

    def w(k, fan_in, fan_out, scale=0.1):
        return jax.random.normal(k, (fan_in, fan_out), jnp.float32) * scale

    def b(k, fan_out, scale=0.01):
        return jax.random.normal(k, (1, fan_out), jnp.float32) * scale

    # color_extract
    w1, b1 = w(ks[0], c_in, 128), b(ks[1], 128)
    w2, b2 = w(ks[2], 128, 64), b(ks[3], 64)
    bn_scale = 1.0 / jnp.sqrt(1.0 + eps)    # fold identity-stat eval BN
    w1, b1 = w1 * bn_scale, b1 * bn_scale
    w2, b2 = w2 * bn_scale, b2 * bn_scale

    # red attention
    wr1, br1 = w(ks[4], 64, 32), b(ks[5], 32)
    wr2, br2 = w(ks[6], 32, 1), b(ks[7], 1)
    # yellow attention
    wy1, by1 = w(ks[8], 64, 32), b(ks[9], 32)
    wy2, by2 = w(ks[10], 32, 1), b(ks[11], 1)
    # reconstruct
    wrec, brec = w(ks[12], 64, c_in), b(ks[13], c_in)

    return (w1, b1, w2, b2, wr1, br1, wr2, br2, wy1, by1, wy2, by2, wrec, brec)


def prep_kernel_params(params):
    """Transpose / fuse / cast the PyTorch-layout params into kernel layout."""
    (w1, b1, w2, b2, wr1, br1, wr2, br2, wy1, by1, wy2, by2, wrec, brec) = params
    f32, bf16 = jnp.float32, jnp.bfloat16
    c_in = w1.shape[0]

    w1t = w1.T.astype(bf16)                                    # (128, C_in)  MXU operand
    b1c = b1.T.astype(f32)                                     # (128, 1)
    w2t = w2.T.astype(bf16)                                    # (64, 128)
    b2c = b2.T.astype(f32)                                     # (64, 1)

    # Fused [red hidden (rows 0..31) | yellow hidden (rows 32..63) |
    # reconstruct (rows 64..64+C_in-1)], M padded to a sublane multiple.
    m = 64 + c_in
    m_pad = ((m + 7) // 8) * 8
    wmid = jnp.zeros((m_pad, 64), f32)
    wmid = wmid.at[0:32, :].set(wr1.T)
    wmid = wmid.at[32:64, :].set(wy1.T)
    wmid = wmid.at[64:64 + c_in, :].set(wrec.T)
    wmid = wmid.astype(bf16)                                   # (M_pad, 64)
    bmid = jnp.zeros((m_pad, 1), f32)
    bmid = (bmid.at[0:32, 0].set(br1[0])
                 .at[32:64, 0].set(by1[0])
                 .at[64:64 + c_in, 0].set(brec[0]))            # (M_pad, 1)

    # Block-diagonal fused 1-channel projections, M padded to 8 sublanes.
    wry2t = jnp.zeros((8, 64), f32)
    wry2t = wry2t.at[0, :32].set(wr2[:, 0]).at[1, 32:].set(wy2[:, 0]).astype(bf16)
    bry2 = jnp.zeros((8, 1), f32)
    bry2 = bry2.at[0, 0].set(br2[0, 0]).at[1, 0].set(by2[0, 0])

    return (w1t, b1c, w2t, b2c, wmid, bmid, wry2t, bry2)


def reference(x_nchw, params):
    """Pure-JAX f32 reference of the same forward (for a sanity check)."""
    (w1, b1, w2, b2, wr1, br1, wr2, br2, wy1, by1, wy2, by2, wrec, brec) = params
    n, c, h, w_ = x_nchw.shape
    x = jnp.transpose(x_nchw, (0, 2, 3, 1)).reshape(-1, c)
    h1 = jnp.maximum(x @ w1 + b1, 0.0)
    col = jnp.maximum(h1 @ w2 + b2, 0.0)
    red = jax.nn.sigmoid(jnp.maximum(col @ wr1 + br1, 0.0) @ wr2 + br2)
    yel = jax.nn.sigmoid(jnp.maximum(col @ wy1 + by1, 0.0) @ wy2 + by2)
    rec = col @ wrec + brec
    enh = x * (rec * (red + yel))

    def back(a, cc):
        return jnp.transpose(a.reshape(n, h, w_, cc), (0, 3, 1, 2))

    return back(enh, c), back(red, 1), back(yel, 1)


if __name__ == "__main__":
    key = jax.random.PRNGKey(0)
    k_x, k_p = jax.random.split(key)

    N, C_IN, H, W = 2, 4, 16, 16
    x = jax.random.normal(k_x, (N, C_IN, H, W), jnp.float32)
    params = init_params(k_p, C_IN)
    kparams = prep_kernel_params(params)

    fn = jax.jit(functools.partial(enhanced_color_attention, tile_t=2048))
    enh, red_w, yel_w = fn(x, kparams)
    jax.block_until_ready((enh, red_w, yel_w))

    # Sanity check against the pure-f32 JAX reference.  Tolerances account for
    # bf16 MXU operands (f32 accumulation) and bf16 bias/ReLU tails on v6e/v7x.
    enh_r, red_r, yel_r = reference(x, params)
    assert enh.shape == enh_r.shape == (N, C_IN, H, W)
    assert red_w.shape == red_r.shape == (N, 1, H, W)
    assert yel_w.shape == yel_r.shape == (N, 1, H, W)
    assert jnp.allclose(enh, enh_r, atol=3e-2, rtol=3e-2)
    assert jnp.allclose(red_w, red_r, atol=1e-2, rtol=1e-2)
    assert jnp.allclose(yel_w, yel_r, atol=1e-2, rtol=1e-2)

    print("KERNEL_OK")
</pallas_src>

<mosaic_0001>
module attributes {stable_mosaic.version = 11 : i64} {
  func.func @_color_attention_kernel(%arg0: i32, %arg1: i32, %arg2: memref<1x4x256xf32, #tpu.memory_space<vmem>>, %arg3: memref<128x4xbf16, #tpu.memory_space<vmem>>, %arg4: memref<128x1xf32, #tpu.memory_space<vmem>>, %arg5: memref<64x128xbf16, #tpu.memory_space<vmem>>, %arg6: memref<64x1xf32, #tpu.memory_space<vmem>>, %arg7: memref<72x64xbf16, #tpu.memory_space<vmem>>, %arg8: memref<72x1xf32, #tpu.memory_space<vmem>>, %arg9: memref<8x64xbf16, #tpu.memory_space<vmem>>, %arg10: memref<8x1xf32, #tpu.memory_space<vmem>>, %arg11: memref<1x4x256xf32, #tpu.memory_space<vmem>>, %arg12: memref<1x2x256xf32, #tpu.memory_space<vmem>>) attributes {dimension_semantics = [#tpu.dimension_semantics<parallel>, #tpu.dimension_semantics<parallel>], iteration_bounds = array<i64: 2, 1>, scalar_prefetch = 0 : i64, scratch_operands = 0 : i64, tpu.core_type = #tpu.core_type<tc>, window_params = [{transform_indices = @transform_0, window_bounds = array<i64: 1, 4, 256>}, {pipeline_mode = #tpu.pipeline_mode<synchronous>, transform_indices = @transform_1, window_bounds = array<i64: 128, 4>}, {pipeline_mode = #tpu.pipeline_mode<synchronous>, transform_indices = @transform_2, window_bounds = array<i64: 128, 1>}, {pipeline_mode = #tpu.pipeline_mode<synchronous>, transform_indices = @transform_3, window_bounds = array<i64: 64, 128>}, {pipeline_mode = #tpu.pipeline_mode<synchronous>, transform_indices = @transform_4, window_bounds = array<i64: 64, 1>}, {pipeline_mode = #tpu.pipeline_mode<synchronous>, transform_indices = @transform_5, window_bounds = array<i64: 72, 64>}, {pipeline_mode = #tpu.pipeline_mode<synchronous>, transform_indices = @transform_6, window_bounds = array<i64: 72, 1>}, {pipeline_mode = #tpu.pipeline_mode<synchronous>, transform_indices = @transform_7, window_bounds = array<i64: 8, 64>}, {pipeline_mode = #tpu.pipeline_mode<synchronous>, transform_indices = @transform_8, window_bounds = array<i64: 8, 1>}, {transform_indices = @transform_9, window_bounds = array<i64: 1, 4, 256>}, {transform_indices = @transform_10, window_bounds = array<i64: 1, 2, 256>}]} {
    %c0 = arith.constant 0 : index
    %c0_0 = arith.constant 0 : index
    %c0_1 = arith.constant 0 : index
    %0 = vector.load %arg2[%c0, %c0_0, %c0_1] : memref<1x4x256xf32, #tpu.memory_space<vmem>>, vector<1x4x256xf32>
    %1 = vector.shape_cast %0 : vector<1x4x256xf32> to vector<4x256xf32>
    %2 = arith.truncf %1 : vector<4x256xf32> to vector<4x256xbf16>
    %c0_2 = arith.constant 0 : index
    %c0_3 = arith.constant 0 : index
    %3 = vector.load %arg3[%c0_2, %c0_3] : memref<128x4xbf16, #tpu.memory_space<vmem>>, vector<128x4xbf16>
    %cst = arith.constant dense<0.000000e+00> : vector<128x256xf32>
    %4 = tpu.matmul %3, %2, %cst {dimension_numbers = #tpu.dot_dimension_numbers<[1], [0], [0], [1], [0, 0, 1, 1], [], []>} : vector<128x4xbf16>, vector<4x256xbf16>, vector<128x256xf32> -> vector<128x256xf32>
    %5 = arith.truncf %4 : vector<128x256xf32> to vector<128x256xbf16>
    %c0_4 = arith.constant 0 : index
    %c0_5 = arith.constant 0 : index
    %6 = vector.load %arg4[%c0_4, %c0_5] : memref<128x1xf32, #tpu.memory_space<vmem>>, vector<128x1xf32>
    %7 = arith.truncf %6 : vector<128x1xf32> to vector<128x1xbf16>
    %8 = vector.broadcast %7 : vector<128x1xbf16> to vector<128x256xbf16>
    %9 = arith.addf %5, %8 : vector<128x256xbf16>
    %cst_6 = arith.constant 0.000000e+00 : bf16
    %10 = vector.broadcast %cst_6 : bf16 to vector<128x256xbf16>
    %11 = arith.maximumf %9, %10 : vector<128x256xbf16>
    %c0_7 = arith.constant 0 : index
    %c0_8 = arith.constant 0 : index
    %12 = vector.load %arg5[%c0_7, %c0_8] : memref<64x128xbf16, #tpu.memory_space<vmem>>, vector<64x128xbf16>
    %cst_9 = arith.constant dense<0.000000e+00> : vector<64x256xf32>
    %13 = tpu.matmul %12, %11, %cst_9 {dimension_numbers = #tpu.dot_dimension_numbers<[1], [0], [0], [1], [0, 0, 1, 1], [], []>} : vector<64x128xbf16>, vector<128x256xbf16>, vector<64x256xf32> -> vector<64x256xf32>
    %14 = arith.truncf %13 : vector<64x256xf32> to vector<64x256xbf16>
    %c0_10 = arith.constant 0 : index
    %c0_11 = arith.constant 0 : index
    %15 = vector.load %arg6[%c0_10, %c0_11] : memref<64x1xf32, #tpu.memory_space<vmem>>, vector<64x1xf32>
    %16 = arith.truncf %15 : vector<64x1xf32> to vector<64x1xbf16>
    %17 = vector.broadcast %16 : vector<64x1xbf16> to vector<64x256xbf16>
    %18 = arith.addf %14, %17 : vector<64x256xbf16>
    %cst_12 = arith.constant 0.000000e+00 : bf16
    %19 = vector.broadcast %cst_12 : bf16 to vector<64x256xbf16>
    %20 = arith.maximumf %18, %19 : vector<64x256xbf16>
    %c0_13 = arith.constant 0 : index
    %c0_14 = arith.constant 0 : index
    %21 = vector.load %arg7[%c0_13, %c0_14] : memref<72x64xbf16, #tpu.memory_space<vmem>>, vector<72x64xbf16>
    %cst_15 = arith.constant dense<0.000000e+00> : vector<72x256xf32>
    %22 = tpu.matmul %21, %20, %cst_15 {dimension_numbers = #tpu.dot_dimension_numbers<[1], [0], [0], [1], [0, 0, 1, 1], [], []>} : vector<72x64xbf16>, vector<64x256xbf16>, vector<72x256xf32> -> vector<72x256xf32>
    %23 = vector.extract_strided_slice %22 {offsets = [0, 0], sizes = [64, 256], strides = [1, 1]} : vector<72x256xf32> to vector<64x256xf32>
    %24 = arith.truncf %23 : vector<64x256xf32> to vector<64x256xbf16>
    %c0_16 = arith.constant 0 : index
    %c0_17 = arith.constant 0 : index
    %25 = vector.load %arg8[%c0_16, %c0_17] : memref<72x1xf32, #tpu.memory_space<vmem>>, vector<64x1xf32>
    %26 = arith.truncf %25 : vector<64x1xf32> to vector<64x1xbf16>
    %27 = vector.broadcast %26 : vector<64x1xbf16> to vector<64x256xbf16>
    %28 = arith.addf %24, %27 : vector<64x256xbf16>
    %cst_18 = arith.constant 0.000000e+00 : bf16
    %29 = vector.broadcast %cst_18 : bf16 to vector<64x256xbf16>
    %30 = arith.maximumf %28, %29 : vector<64x256xbf16>
    %31 = vector.extract_strided_slice %22 {offsets = [64, 0], sizes = [4, 256], strides = [1, 1]} : vector<72x256xf32> to vector<4x256xf32>
    %c64 = arith.constant 64 : index
    %c0_19 = arith.constant 0 : index
    %32 = vector.load %arg8[%c64, %c0_19] : memref<72x1xf32, #tpu.memory_space<vmem>>, vector<4x1xf32>
    %33 = vector.broadcast %32 : vector<4x1xf32> to vector<4x256xf32>
    %34 = arith.addf %31, %33 : vector<4x256xf32>
    %c0_20 = arith.constant 0 : index
    %c0_21 = arith.constant 0 : index
    %35 = vector.load %arg9[%c0_20, %c0_21] : memref<8x64xbf16, #tpu.memory_space<vmem>>, vector<8x64xbf16>
    %cst_22 = arith.constant dense<0.000000e+00> : vector<8x256xf32>
    %36 = tpu.matmul %35, %30, %cst_22 {dimension_numbers = #tpu.dot_dimension_numbers<[1], [0], [0], [1], [0, 0, 1, 1], [], []>} : vector<8x64xbf16>, vector<64x256xbf16>, vector<8x256xf32> -> vector<8x256xf32>
    %c0_23 = arith.constant 0 : index
    %c0_24 = arith.constant 0 : index
    %37 = vector.load %arg10[%c0_23, %c0_24] : memref<8x1xf32, #tpu.memory_space<vmem>>, vector<8x1xf32>
    %38 = vector.broadcast %37 : vector<8x1xf32> to vector<8x256xf32>
    %39 = arith.addf %36, %38 : vector<8x256xf32>
    %40 = vector.extract_strided_slice %39 {offsets = [0, 0], sizes = [2, 256], strides = [1, 1]} : vector<8x256xf32> to vector<2x256xf32>
    %41 = arith.negf %40 : vector<2x256xf32>
    %42 = math.exp %41 : vector<2x256xf32>
    %cst_25 = arith.constant 1.000000e+00 : f32
    %43 = vector.broadcast %cst_25 : f32 to vector<2x256xf32>
    %44 = arith.addf %43, %42 : vector<2x256xf32>
    %45 = arith.divf %43, %44 : vector<2x256xf32>
    %46 = vector.extract_strided_slice %45 {offsets = [0, 0], sizes = [1, 256], strides = [1, 1]} : vector<2x256xf32> to vector<1x256xf32>
    %47 = vector.extract_strided_slice %45 {offsets = [1, 0], sizes = [1, 256], strides = [1, 1]} : vector<2x256xf32> to vector<1x256xf32>
    %48 = arith.addf %46, %47 : vector<1x256xf32>
    %49 = vector.broadcast %48 : vector<1x256xf32> to vector<4x256xf32>
    %50 = arith.mulf %34, %49 : vector<4x256xf32>
    %51 = arith.mulf %1, %50 : vector<4x256xf32>
    %c0_26 = arith.constant 0 : index
    %c0_27 = arith.constant 0 : index
    %c0_28 = arith.constant 0 : index
    %52 = vector.load %arg11[%c0_26, %c0_27, %c0_28] : memref<1x4x256xf32, #tpu.memory_space<vmem>>, vector<1x4x256xf32>
    %53 = vector.shape_cast %52 : vector<1x4x256xf32> to vector<4x256xf32>
    %54 = vector.shape_cast %51 : vector<4x256xf32> to vector<1x4x256xf32>
    tpu.vector_store %arg11[%c0_26, %c0_27, %c0_28], %54 {strides = array<i32>} : memref<1x4x256xf32, #tpu.memory_space<vmem>>, vector<1x4x256xf32>,
    %c0_29 = arith.constant 0 : index
    %c0_30 = arith.constant 0 : index
    %c0_31 = arith.constant 0 : index
    %55 = vector.load %arg12[%c0_29, %c0_30, %c0_31] : memref<1x2x256xf32, #tpu.memory_space<vmem>>, vector<1x2x256xf32>
    %56 = vector.shape_cast %55 : vector<1x2x256xf32> to vector<2x256xf32>
    %57 = vector.shape_cast %45 : vector<2x256xf32> to vector<1x2x256xf32>
    tpu.vector_store %arg12[%c0_29, %c0_30, %c0_31], %57 {strides = array<i32>} : memref<1x2x256xf32, #tpu.memory_space<vmem>>, vector<1x2x256xf32>,
    return
  }
  func.func @transform_0(%arg0: i32, %arg1: i32) -> (i32, i32, i32) {
    %c0_i32 = arith.constant 0 : i32
    %c0_i32_0 = arith.constant 0 : i32
    return %arg0, %c0_i32, %arg1 : i32, i32, i32
  }
  func.func @transform_1(%arg0: i32, %arg1: i32) -> (i32, i32) {
    %c0_i32 = arith.constant 0 : i32
    %c0_i32_0 = arith.constant 0 : i32
    %c0_i32_1 = arith.constant 0 : i32
    return %c0_i32, %c0_i32_0 : i32, i32
  }
  func.func @transform_2(%arg0: i32, %arg1: i32) -> (i32, i32) {
    %c0_i32 = arith.constant 0 : i32
    %c0_i32_0 = arith.constant 0 : i32
    %c0_i32_1 = arith.constant 0 : i32
    return %c0_i32, %c0_i32_0 : i32, i32
  }
  func.func @transform_3(%arg0: i32, %arg1: i32) -> (i32, i32) {
    %c0_i32 = arith.constant 0 : i32
    %c0_i32_0 = arith.constant 0 : i32
    %c0_i32_1 = arith.constant 0 : i32
    return %c0_i32, %c0_i32_0 : i32, i32
  }
  func.func @transform_4(%arg0: i32, %arg1: i32) -> (i32, i32) {
    %c0_i32 = arith.constant 0 : i32
    %c0_i32_0 = arith.constant 0 : i32
    %c0_i32_1 = arith.constant 0 : i32
    return %c0_i32, %c0_i32_0 : i32, i32
  }
  func.func @transform_5(%arg0: i32, %arg1: i32) -> (i32, i32) {
    %c0_i32 = arith.constant 0 : i32
    %c0_i32_0 = arith.constant 0 : i32
    %c0_i32_1 = arith.constant 0 : i32
    return %c0_i32, %c0_i32_0 : i32, i32
  }
  func.func @transform_6(%arg0: i32, %arg1: i32) -> (i32, i32) {
    %c0_i32 = arith.constant 0 : i32
    %c0_i32_0 = arith.constant 0 : i32
    %c0_i32_1 = arith.constant 0 : i32
    return %c0_i32, %c0_i32_0 : i32, i32
  }
  func.func @transform_7(%arg0: i32, %arg1: i32) -> (i32, i32) {
    %c0_i32 = arith.constant 0 : i32
    %c0_i32_0 = arith.constant 0 : i32
    %c0_i32_1 = arith.constant 0 : i32
    return %c0_i32, %c0_i32_0 : i32, i32
  }
  func.func @transform_8(%arg0: i32, %arg1: i32) -> (i32, i32) {
    %c0_i32 = arith.constant 0 : i32
    %c0_i32_0 = arith.constant 0 : i32
    %c0_i32_1 = arith.constant 0 : i32
    return %c0_i32, %c0_i32_0 : i32, i32
  }
  func.func @transform_9(%arg0: i32, %arg1: i32) -> (i32, i32, i32) {
    %c0_i32 = arith.constant 0 : i32
    %c0_i32_0 = arith.constant 0 : i32
    return %arg0, %c0_i32, %arg1 : i32, i32, i32
  }
  func.func @transform_10(%arg0: i32, %arg1: i32) -> (i32, i32, i32) {
    %c0_i32 = arith.constant 0 : i32
    %c0_i32_0 = arith.constant 0 : i32
    return %arg0, %c0_i32, %arg1 : i32, i32, i32
  }
}

</mosaic_0001>

<bundles_post_ra>
// kernel: enhanced_color_attention.1
= control target key start
LH: loop header
LB: loop body
LE: loop exit
PB: predicated region body
PF: predicated region fallthrough
CT: control target
= control target key end

     0   :  { %s1531_s13 = smov 0   ;;  %s1533_s14 = smov 0   ;;  %s1864_s0 = inlined_call_operand.vmem [shape: f32[2,4,256], index: 0, kind: input, shape index: {}]   ;;  %s1865_s1 = inlined_call_operand.vmem [shape: bf16[128,4], index: 1, kind: input, shape index: {}]   ;;  %s1866_s2 = inlined_call_operand.vmem [shape: f32[128,1], index: 2, kind: input, shape index: {}]   ;;  %s1867_s3 = inlined_call_operand.vmem [shape: bf16[64,128], index: 3, kind: input, shape index: {}]   ;;  %s1868_s4 = inlined_call_operand.vmem [shape: f32[64,1], index: 4, kind: input, shape index: {}]   ;;  %s1869_s5 = inlined_call_operand.vmem [shape: bf16[72,64], index: 5, kind: input, shape index: {}]   ;;  %s1870_s6 = inlined_call_operand.vmem [shape: f32[72,1], index: 6, kind: input, shape index: {}]   ;;  %s1871_s7 = inlined_call_operand.vmem [shape: bf16[8,64], index: 7, kind: input, shape index: {}]   ;;  %s1872_s8 = inlined_call_operand.vmem [shape: f32[8,1], index: 8, kind: input, shape index: {}]   ;;  %s1873_s9 = inlined_call_operand.vmem [shape: f32[2,4,256], index: 9, kind: output, shape index: {0}]   ;;  %s1874_s10 = inlined_call_operand.vmem [shape: f32[2,2,256], index: 10, kind: output, shape index: {1}]  }
   0x1   :  { %s1535_s15 = smov 0  }
   0x2 LB: > { %s33_s16 = sadd.s32 1, %s1469_s14  ;;  %p1335_p0 = scmp.ge.s32.totalorder %s1473_s15, 1  ;;  %s1473_s15 = sphi %s1535_s15, %s21_s15   ;;  %s1469_s14 = sphi %s1533_s14, %s1876_s14   ;;  %s1465_s13 = sphi %s1531_s13, %s1875_s13  }
   0x3   : > { %p35_p1 = scmp.ge.s32.totalorder %s33_s16, 2  ;;  %p338_p2 = scmp.lt.s32.totalorder %s1473_s15, 3 }
   0x5   : > { %s1878_s16 = smov (%p35_p1, %s33_s16), 0  ;;  %p339_p3 = pnand %p1335_p0, %p338_p2 }
   0x6   : > { %p394_p4 = scmp.lt.s32.totalorder (!%p339_p3), %s1465_s13, 1 }
   0x7   : > { %342 = sbr.rel (%p339_p3) target bundleno = 1033 (0x409), region = 56 }
   0xc   : > { %v1475_v0 = vmov 0   ;;  %s1880_s13 = smov (!%p394_p4, %s1465_s13), 1  ;;  %vm511_vm0 = vcmask 1041408   ;;  %v657_v4 = vld [vmem:[%s1866_s2 + $0x50] sm:$0xff]  ;;  %v658_v7 = vld [vmem:[%s1866_s2 + $0x58] sm:$0xff]  ;;  %v655_v8 = vld [vmem:[%s1866_s2 + $0x40] sm:$0xff] }
   0xd   : > { %550 = vmatprep.mubr.bf16.mxu0 %v1475_v0  ;;  %1424 = vset.pattern.permute.xlu1 %v1475_v0  ;;  %s1379_s17 = sshll.u32 %s1880_s13, 3  ;;  %v656_v9 = vld [vmem:[%s1866_s2 + $0x48] sm:$0xff]  ;;  %v668_v10 = vpack.c.bf16 %v658_v7, %v657_v4  ;;  %v661_v11 = vld [vmem:[%s1866_s2 + $0x70] sm:$0xff]  ;;  %v1426_v12 = vld [vmem:[%s1865_s1] sm:$0xff]   ;;  %vm486_vm1 = vcmask 31744   ;;  %vm936_vm2 = vcmask 523264  }
   0xe   : > { %1423 = vset.pattern.permute.xlu0 %v1475_v0  ;;  %827 = vmatprep.mubr.bf16.mxu1 %v1475_v0  ;;  %s401_s20 = scalar_lea.vmem %s1864_s0, %s1379_s17  ;;  %v662_v13 = vld [vmem:[%s1866_s2 + $0x78] sm:$0xff]  ;;  %v667_v14 = vpack.c.bf16 %v656_v9, %v655_v8  ;;  %v659_v16 = vld [vmem:[%s1866_s2 + $0x60] sm:$0xff]  ;;  %v660_v17 = vld [vmem:[%s1866_s2 + $0x68] sm:$0xff]  ;;  %s411_s26 = scalar_lea.vmem %s1873_s9, %s1379_s17 }
   0xf   : > { %v1561_v1 = vld [vmem:[%s401_s20] sm:$0xff]  ;;  %698 = vperm.xlu1 %1424, %v668_v10   ;;  %v670_v15 = vpack.c.bf16 %v662_v13, %v661_v11  ;;  %v652_v19 = vld [vmem:[%s1866_s2 + $0x28] sm:$0xff]  ;;  %v669_v20 = vpack.c.bf16 %v660_v17, %v659_v16  ;;  %v653_v21 = vld [vmem:[%s1866_s2 + $0x30] sm:$0xff]  ;;  %s1381_s20 = sshll.u32 %s1880_s13, 2 }
  0x10   : > { %v426_v2 = vcombine.high %v1561_v1, %v1561_v1  ;;  %v428_v3 = vpack.c.bf16 %v1561_v1, %v1561_v1  ;;  %v651_v18 = vld [vmem:[%s1866_s2 + $0x20] sm:$0xff]  ;;  %v654_v22 = vld [vmem:[%s1866_s2 + $0x38] sm:$0xff]  ;;  %v648_v25 = vld [vmem:[%s1866_s2 + $0x8] sm:$0xff]  ;;  %s421_s23 = scalar_lea.vmem %s1874_s10, %s1381_s20 }
  0x11   : > { %708 = vperm.xlu0 %1423, %v670_v15   ;;  %v665_v23 = vpack.c.bf16 %v652_v19, %v651_v18  ;;  %v647_v24 = vld [vmem:[%s1866_s2] sm:$0xff]  ;;  %v1427_v26 = vld [vmem:[%s1865_s1 + $0x8] sm:$0xff]   ;;  %v666_v27 = vpack.c.bf16 %v654_v22, %v653_v21  ;;  %v649_v28 = vld [vmem:[%s1866_s2 + $0x10] sm:$0xff] }
  0x12   : > { %v429_v5 = vpack.c.bf16 %v426_v2, %v426_v2  ;;  %v513_v6 = vsel %vm511_vm0, %v428_v3, 0  ;;  %v650_v29 = vld [vmem:[%s1866_s2 + $0x18] sm:$0xff]  ;;  %v860_v30 = vld [vmem:[%s1868_s4 + $0x20] sm:$0xff]  ;;  %v861_v31 = vld [vmem:[%s1868_s4 + $0x28] sm:$0xff]  ;;  %v663_v32 = vpack.c.bf16 %v648_v25, %v647_v24 }
  0x13   : > { %693 = vperm.xlu1 %1424, %v667_v14   ;;  %v862_v33 = vld [vmem:[%s1868_s4 + $0x30] sm:$0xff]  ;;  %v863_v34 = vld [vmem:[%s1868_s4 + $0x38] sm:$0xff]  ;;  %v664_v35 = vpack.c.bf16 %v650_v29, %v649_v28  ;;  %v856_v36 = vld [vmem:[%s1868_s4] sm:$0xff]  ;;  %v866_v37 = vpack.c.bf16 %v861_v31, %v860_v30 }
  0x14   : > { %1350 = vmatprep.subr.msk.bf16.mxu0 %vm511_vm0, %v429_v5  ;;  %v857_v38 = vld [vmem:[%s1868_s4 + $0x8] sm:$0xff]  ;;  %v867_v39 = vpack.c.bf16 %v863_v34, %v862_v33  ;;  %v1428_v40 = vld [vmem:[%s1865_s1 + $0x10] sm:$0xff]   ;;  %v859_v42 = vld [vmem:[%s1868_s4 + $0x18] sm:$0xff] }
  0x15   : > { %533 = vmatpush1.bf16.msra.mxu0 %v513_v6  ;;  %703 = vperm.xlu0 %1423, %v669_v20   ;;  %v858_v41 = vld [vmem:[%s1868_s4 + $0x10] sm:$0xff]  ;;  %v864_v43 = vpack.c.bf16 %v857_v38, %v856_v36  ;;  %v1045_v44 = vld [vmem:[%s1870_s6 + $0x20] sm:$0xff]  ;;  %v1046_v45 = vld [vmem:[%s1870_s6 + $0x28] sm:$0xff] }
  0x16   : > { %v865_v46 = vpack.c.bf16 %v859_v42, %v858_v41  ;;  %v1047_v47 = vld [vmem:[%s1870_s6 + $0x30] sm:$0xff]  ;;  %v1048_v48 = vld [vmem:[%s1870_s6 + $0x38] sm:$0xff]  ;;  %v1051_v49 = vpack.c.bf16 %v1046_v45, %v1045_v44  ;;  %v1041_v50 = vld [vmem:[%s1870_s6] sm:$0xff] }
  0x17   : > { %683 = vperm.xlu1 %1424, %v665_v23   ;;  %v1042_v51 = vld [vmem:[%s1870_s6 + $0x8] sm:$0xff]  ;;  %v1052_v52 = vpack.c.bf16 %v1048_v48, %v1047_v47  ;;  %v1429_v53 = vld [vmem:[%s1865_s1 + $0x18] sm:$0xff]   ;;  %v1043_v54 = vld [vmem:[%s1870_s6 + $0x10] sm:$0xff] }
  0x18   : > { %1351 = vmatmul.mubr.msk.bf16.vlgmr.msra.gmra.mxu0 %vm486_vm1, %v1426_v12  ;;  %v1044_v55 = vld [vmem:[%s1870_s6 + $0x18] sm:$0xff]  ;;  %v1049_v56 = vpack.c.bf16 %v1042_v51, %v1041_v50  ;;  %v1089_v58 = vld [vmem:[%s1870_s6 + $0x40] sm:$0xf]  ;;  %v1431_v61 = vld [vmem:[%s1865_s1 + $0x28] sm:$0xff]  }
  0x19   : > { %560 = vmatprep.mubr.bf16.mxu0 %v1475_v0  ;;  %688 = vperm.xlu0 %1423, %v666_v27   ;;  %v1050_v57 = vpack.c.bf16 %v1044_v55, %v1043_v54  ;;  %v1430_v59 = vld [vmem:[%s1865_s1 + $0x20] sm:$0xff]   ;;  %v1432_v62 = vld [vmem:[%s1865_s1 + $0x30] sm:$0xff]   ;;  %v1433_v63 = vld [vmem:[%s1865_s1 + $0x38] sm:$0xff]  }
  0x1a   : > { %v1098_v60 = vld [vmem:[%s1872_s8] sm:$0xff] }
  0x1b   : > { %673 = vperm.xlu1 %1424, %v663_v32  }
  0x1d   : > { %678 = vperm.xlu0 %1423, %v664_v35  }
  0x1f   : > { %880 = vperm.xlu1 %1424, %v866_v37  }
  0x20   : > { %1352 = vmatmul.mubr.msk.bf16.gmra.mxu0 %vm486_vm1, %v1427_v26 }
  0x21   : > { %570 = vmatprep.mubr.bf16.mxu0 %v1475_v0  ;;  %885 = vperm.xlu0 %1423, %v867_v39  }
  0x23   : > { %870 = vperm.xlu1 %1424, %v864_v43  }
  0x25   : > { %875 = vperm.xlu0 %1423, %v865_v46  }
  0x27   : > { %1065 = vperm.xlu1 %1424, %v1051_v49  }
  0x28   : > { %1353 = vmatmul.mubr.msk.bf16.gmra.mxu0 %vm486_vm1, %v1428_v40 }
  0x29   : > { %580 = vmatprep.mubr.bf16.mxu0 %v1475_v0  ;;  %1070 = vperm.xlu0 %1423, %v1052_v52  }
  0x2b   : > { %1055 = vperm.xlu1 %1424, %v1049_v56  }
  0x2d   : > { %1060 = vperm.xlu0 %1423, %v1050_v57  }
  0x2f   : > { %1092 = vperm.xlu1 %1424, %v1089_v58  }
  0x30   : > { %1354 = vmatmul.mubr.msk.bf16.gmra.mxu0 %vm486_vm1, %v1429_v53 }
  0x31   : > { %590 = vmatprep.mubr.bf16.mxu0 %v1475_v0  ;;  %1101 = vperm.xlu0 %1423, %v1098_v60  }
  0x38   : > { %1355 = vmatmul.mubr.msk.bf16.gmra.mxu0 %vm486_vm1, %v1430_v59 }
  0x39   : > { %600 = vmatprep.mubr.bf16.mxu0 %v1475_v0 }
  0x40   : > { %1356 = vmatmul.mubr.msk.bf16.gmra.mxu0 %vm486_vm1, %v1431_v61 }
  0x41   : > { %610 = vmatprep.mubr.bf16.mxu0 %v1475_v0 }
  0x48   : > { %1357 = vmatmul.mubr.msk.bf16.gmra.mxu0 %vm486_vm1, %v1432_v62 }
  0x49   : > { %620 = vmatprep.mubr.bf16.mxu0 %v1475_v0 }
  0x50   : > { %1358 = vmatmul.mubr.msk.bf16.gmra.mxu0 %vm486_vm1, %v1433_v63 }
  0x51   : > { %807 = vmatprep.mubr.bf16.mxu0 %v1475_v0 }
  0x8a   : > { %v699_v48 = vpop.permute.xlu1 %698 }
  0x8c   : > { %v709_v35 = vpop.permute.xlu0 %708 }
  0x8e   : > { %v694_v56 = vpop.permute.xlu1 %693 }
  0x90   : > { %v704_v42 = vpop.permute.xlu0 %703 }
  0x94   : > { %v689_v63 = vpop.permute.xlu0 %688 }
  0xd8   : > { %v1709_v2 = vpop.f32.mrf.mxu0 }
  0xda   : > { %v1711_v3 = vpop.f32.mrf.mxu0 }
  0xdc   : > { %v1713_v4 = vpop.f32.mrf.mxu0 }
  0xdd   : > { %v631_v5 = vpack.c.bf16 %v1713_v4, %v1709_v2  ;;  %v1436_v2 = vld [vmem:[%s1867_s3 + $0x8] sm:$0xff]   ;;  %v1437_v4 = vld [vmem:[%s1867_s3 + $0x18] sm:$0xff]  }
  0xde   : > { %v1717_v6 = vpop.f32.mrf.mxu0 }
  0xdf   : > { %v632_v7 = vpack.c.bf16 %v1717_v6, %v1711_v3  ;;  %v1434_v6 = vld [vmem:[%s1867_s3] sm:$0xff]  }
  0xe0   : > { %v1721_v8 = vpop.f32.mrf.mxu0 }
  0xe2   : > { %v1723_v9 = vpop.f32.mrf.mxu0 }
  0xe4   : > { %v1725_v10 = vpop.f32.mrf.mxu0 }
  0xe5   : > { %v633_v11 = vpack.c.bf16 %v1725_v10, %v1721_v8 }
  0xe6   : > { %v1729_v12 = vpop.f32.mrf.mxu0 }
  0xe7   : > { %v634_v13 = vpack.c.bf16 %v1729_v12, %v1723_v9 }
  0xe8   : > { %v1733_v14 = vpop.f32.mrf.mxu0 }
  0xea   : > { %v1735_v15 = vpop.f32.mrf.mxu0 }
  0xec   : > { %v1737_v16 = vpop.f32.mrf.mxu0 }
  0xee   : > { %v1739_v17 = vpop.f32.mrf.mxu0 }
  0xf0   : > { %v1741_v18 = vpop.f32.mrf.mxu0 }
  0xf2   : > { %v584_v19 = vpop.f32.mrf.mxu0 }
  0xf4   : > { %v1743_v20 = vpop.f32.mrf.mxu0 }
  0xf6   : > { %v588_v21 = vpop.f32.mrf.mxu0 }
  0xf7   : > { %v638_v60 = vpack.c.bf16 %v588_v21, %v584_v19  ;;  %v684_v21 = vpop.permute.xlu1 %683 }
  0xf8   : > { %v592_v22 = vpop.f32.mrf.mxu0 }
  0xfa   : > { %v594_v23 = vpop.f32.mrf.mxu0 }
  0xfc   : > { %v596_v24 = vpop.f32.mrf.mxu0 }
  0xfd   : > { %v639_v57 = vpack.c.bf16 %v596_v24, %v592_v22  ;;  %v636_v22 = vpack.c.bf16 %v1739_v17, %v1735_v15  ;;  %v718_v24 = vadd.bf16 %v689_v63, %v638_v60  ;;  %v679_v15 = vpop.permute.xlu0 %678 }
  0xfe   : > { %v598_v25 = vpop.f32.mrf.mxu0 }
  0xff   : > { %v640_v53 = vpack.c.bf16 %v598_v25, %v594_v23  ;;  %v637_v23 = vpack.c.bf16 %v1743_v20, %v1741_v18  ;;  %v719_v25 = vadd.bf16 %v694_v56, %v639_v57  ;;  %v716_v20 = vadd.bf16 %v684_v21, %v636_v22 }
 0x100   : > { %v602_v26 = vpop.f32.mrf.mxu0 }
 0x101   : > { %v720_v61 = vadd.bf16 %v694_v56, %v640_v53  ;;  %v735_v18 = vmax.bf16 %v1475_v0, %v719_v25 }
 0x102   : > { %v604_v27 = vpop.f32.mrf.mxu0 }
 0x103   : > { %v736_v19 = vmax.bf16 %v1475_v0, %v720_v61 }
 0x104   : > { %v606_v28 = vpop.f32.mrf.mxu0 }
 0x105   : > { %v641_v50 = vpack.c.bf16 %v606_v28, %v602_v26  ;;  %v717_v28 = vadd.bf16 %v689_v63, %v637_v23 }
 0x106   : > { %v608_v29 = vpop.f32.mrf.mxu0 }
 0x107   : > { %v642_v45 = vpack.c.bf16 %v608_v29, %v604_v27  ;;  %v721_v58 = vadd.bf16 %v699_v48, %v641_v50  ;;  %v635_v27 = vpack.c.bf16 %v1737_v16, %v1733_v14  ;;  %v734_v29 = vmax.bf16 %v1475_v0, %v718_v24  ;;  %v674_v16 = vpop.permute.xlu1 %673 }
 0x108   : > { %v612_v30 = vpop.f32.mrf.mxu0  ;;  %v732_v14 = vmax.bf16 %v1475_v0, %v716_v20  ;;  %v711_v12 = vadd.bf16 %v674_v16, %v631_v5 }
 0x109   : > { %v722_v54 = vadd.bf16 %v699_v48, %v642_v45  ;;  %v737_v26 = vmax.bf16 %v1475_v0, %v721_v58  ;;  %v715_v17 = vadd.bf16 %v684_v21, %v635_v27 }
 0x10a   : > { %v614_v31 = vpop.f32.mrf.mxu0  ;;  %v727_v3 = vmax.bf16 %v1475_v0, %v711_v12 }
 0x10b   : > { %v738_v62 = vmax.bf16 %v1475_v0, %v722_v54 }
 0x10c   : > { %v616_v32 = vpop.f32.mrf.mxu0 }
 0x10d   : > { %v643_v43 = vpack.c.bf16 %v616_v32, %v612_v30  ;;  %v733_v30 = vmax.bf16 %v1475_v0, %v717_v28  ;;  %v713_v32 = vadd.bf16 %v679_v15, %v633_v11 }
 0x10e   : > { %v618_v33 = vpop.f32.mrf.mxu0 }
 0x10f   : > { %v644_v38 = vpack.c.bf16 %v618_v33, %v614_v31  ;;  %v723_v51 = vadd.bf16 %v704_v42, %v643_v43  ;;  %v714_v31 = vadd.bf16 %v679_v15, %v634_v13  ;;  %v731_v33 = vmax.bf16 %v1475_v0, %v715_v17  ;;  %v1438_v15 = vld [vmem:[%s1869_s5] sm:$0xff]   ;;  %v1439_v17 = vld [vmem:[%s1869_s5 + $0x8] sm:$0xff]  }
 0x110   : > { %v622_v34 = vpop.f32.mrf.mxu0  ;;  %v729_v13 = vmax.bf16 %v1475_v0, %v713_v32 }
 0x111   : > { %v724_v46 = vadd.bf16 %v704_v42, %v644_v38  ;;  %v739_v59 = vmax.bf16 %v1475_v0, %v723_v51  ;;  %v730_v9 = vmax.bf16 %v1475_v0, %v714_v31  ;;  %v1441_v31 = vld [vmem:[%s1869_s5 + $0x18] sm:$0xff]  }
 0x112   : > { %v624_v36 = vpop.f32.mrf.mxu0 }
 0x113   : > { %v740_v55 = vmax.bf16 %v1475_v0, %v724_v46  ;;  %v886_v46 = vpop.permute.xlu0 %885 }
 0x114   : > { %v626_v37 = vpop.f32.mrf.mxu0 }
 0x115   : > { %v645_v39 = vpack.c.bf16 %v626_v37, %v622_v34  ;;  %v712_v34 = vadd.bf16 %v674_v16, %v632_v7  ;;  %v1435_v7 = vld [vmem:[%s1867_s3 + $0x10] sm:$0xff]  }
 0x116   : > { %v628_v40 = vpop.f32.mrf.mxu0 }
 0x117   : > { %v646_v41 = vpack.c.bf16 %v628_v40, %v624_v36  ;;  %v725_v44 = vadd.bf16 %v709_v35, %v645_v39  ;;  %v728_v8 = vmax.bf16 %v1475_v0, %v712_v34 }
 0x119   : > { %v726_v47 = vadd.bf16 %v709_v35, %v646_v41  ;;  %v741_v52 = vmax.bf16 %v1475_v0, %v725_v44 }
 0x11b   : > { %v742_v49 = vmax.bf16 %v1475_v0, %v726_v47 }
 0x11d   : > { %775 = vmatprep.subr.bf16.mxu0 %v742_v49  ;;  %1382 = vmatprep.subr.bf16.mxu1 %v742_v49 }
 0x11e   : > { %776 = vmatpush1.bf16.msra.mxu0 %v741_v52  ;;  %1390 = vmatpush1.bf16.msra.mxu1 %v741_v52  ;;  %v881_v52 = vpop.permute.xlu1 %880 }
 0x11f   : > { %777 = vmatprep.subr.bf16.mxu0 %v740_v55  ;;  %1383 = vmatprep.subr.bf16.mxu1 %v740_v55 }
 0x122   : > { %778 = vmatpush1.bf16.msra.mxu0 %v739_v59  ;;  %1391 = vmatpush1.bf16.msra.mxu1 %v739_v59  ;;  %v876_v59 = vpop.permute.xlu0 %875 }
 0x123   : > { %779 = vmatprep.subr.bf16.mxu0 %v738_v62  ;;  %1384 = vmatprep.subr.bf16.mxu1 %v738_v62 }
 0x126   : > { %780 = vmatpush1.bf16.msra.mxu0 %v737_v26  ;;  %1392 = vmatpush1.bf16.msra.mxu1 %v737_v26  ;;  %v871_v26 = vpop.permute.xlu1 %870 }
 0x127   : > { %781 = vmatprep.subr.bf16.mxu0 %v736_v19  ;;  %1385 = vmatprep.subr.bf16.mxu1 %v736_v19 }
 0x12a   : > { %782 = vmatpush1.bf16.msra.mxu0 %v735_v18  ;;  %1393 = vmatpush1.bf16.msra.mxu1 %v735_v18 }
 0x12b   : > { %783 = vmatprep.subr.bf16.mxu0 %v734_v29  ;;  %1386 = vmatprep.subr.bf16.mxu1 %v734_v29 }
 0x12e   : > { %784 = vmatpush1.bf16.msra.mxu0 %v733_v30  ;;  %1394 = vmatpush1.bf16.msra.mxu1 %v733_v30  ;;  %v1440_v30 = vld [vmem:[%s1869_s5 + $0x10] sm:$0xff]  }
 0x12f   : > { %785 = vmatprep.subr.bf16.mxu0 %v732_v14  ;;  %1387 = vmatprep.subr.bf16.mxu1 %v732_v14  ;;  %v1442_v14 = vld [vmem:[%s1869_s5 + $0x20] ss:$0 sps:$4 sm:$0xff]  }
 0x132   : > { %786 = vmatpush1.bf16.msra.mxu0 %v731_v33  ;;  %1395 = vmatpush1.bf16.msra.mxu1 %v731_v33 }
 0x133   : > { %787 = vmatprep.subr.bf16.mxu0 %v730_v9  ;;  %1388 = vmatprep.subr.bf16.mxu1 %v730_v9 }
 0x136   : > { %788 = vmatpush1.bf16.msra.mxu0 %v729_v13  ;;  %1396 = vmatpush1.bf16.msra.mxu1 %v729_v13 }
 0x137   : > { %789 = vmatprep.subr.bf16.mxu0 %v728_v8  ;;  %1389 = vmatprep.subr.bf16.mxu1 %v728_v8 }
 0x13a   : > { %790 = vmatpush1.bf16.msra.mxu0 %v727_v3  ;;  %1397 = vmatpush1.bf16.msra.mxu1 %v727_v3 }
 0x13d   : > { %808 = vmatmul.mubr.bf16.vlgmr.msra.gmra.mxu0 %v1434_v6  ;;  %828 = vmatmul.mubr.bf16.vlgmr.msra.gmra.mxu1 %v1435_v7 }
 0x13e   : > { %817 = vmatprep.mubr.bf16.mxu0 %v1475_v0  ;;  %837 = vmatprep.mubr.bf16.mxu1 %v1475_v0 }
 0x145   : > { %818 = vmatmul.mubr.bf16.gmra.mxu0 %v1436_v2  ;;  %838 = vmatmul.mubr.bf16.gmra.mxu1 %v1437_v4 }
 0x146   : > { %984 = vmatprep.mubr.bf16.mxu1 %v1475_v0  ;;  %1139 = vmatprep.mubr.bf16.mxu0 %v1475_v0 }
 0x1fd   : > { %v809_v5 = vpop.f32.mrf.mxu0  ;;  %v829_v10 = vpop.f32.mrf.mxu1 }
 0x1ff   : > { %v811_v11 = vpop.f32.mrf.mxu0  ;;  %v831_v35 = vpop.f32.mrf.mxu1 }
 0x201   : > { %v813_v36 = vpop.f32.mrf.mxu0  ;;  %v833_v37 = vpop.f32.mrf.mxu1 }
 0x202   : > { %v852_v53 = vpack.c.bf16 %v833_v37, %v829_v10  ;;  %v848_v22 = vpack.c.bf16 %v813_v36, %v809_v5  ;;  %v1071_v36 = vpop.permute.xlu0 %1070 }
 0x203   : > { %v815_v38 = vpop.f32.mrf.mxu0  ;;  %v835_v39 = vpop.f32.mrf.mxu1 }
 0x204   : > { %v853_v47 = vpack.c.bf16 %v835_v39, %v831_v35  ;;  %v892_v60 = vadd.bf16 %v881_v52, %v852_v53  ;;  %v849_v63 = vpack.c.bf16 %v815_v38, %v811_v11  ;;  %v888_v28 = vadd.bf16 %v871_v26, %v848_v22  ;;  %v1066_v39 = vpop.permute.xlu1 %1065  ;;  %v1097_v22 = vld [vmem:[%s1871_s7] sm:$0xf] }
 0x205   : > { %v819_v40 = vpop.f32.mrf.mxu0  ;;  %v839_v41 = vpop.f32.mrf.mxu1 }
 0x206   : > { %v893_v55 = vadd.bf16 %v881_v52, %v853_v47  ;;  %v900_v24 = vmax.bf16 %v1475_v0, %v892_v60  ;;  %v889_v21 = vadd.bf16 %v871_v26, %v849_v63  ;;  %v896_v29 = vmax.bf16 %v1475_v0, %v888_v28 }
 0x207   : > { %v821_v42 = vpop.f32.mrf.mxu0  ;;  %v841_v43 = vpop.f32.mrf.mxu1 }
 0x208   : > { %v901_v25 = vmax.bf16 %v1475_v0, %v893_v55  ;;  %v897_v20 = vmax.bf16 %v1475_v0, %v889_v21 }
 0x209   : > { %v823_v44 = vpop.f32.mrf.mxu0  ;;  %v843_v45 = vpop.f32.mrf.mxu1 }
 0x20a   : > { %v854_v48 = vpack.c.bf16 %v843_v45, %v839_v41  ;;  %v850_v61 = vpack.c.bf16 %v823_v44, %v819_v40 }
 0x20b   : > { %v825_v49 = vpop.f32.mrf.mxu0  ;;  %v845_v50 = vpop.f32.mrf.mxu1 }
 0x20c   : > { %v855_v51 = vpack.c.bf16 %v845_v50, %v841_v43  ;;  %v894_v54 = vadd.bf16 %v886_v46, %v854_v48  ;;  %v851_v56 = vpack.c.bf16 %v825_v49, %v821_v42  ;;  %v890_v19 = vadd.bf16 %v876_v59, %v850_v61  ;;  %v1061_v48 = vpop.permute.xlu0 %1060 }
 0x20e   : > { %v895_v57 = vadd.bf16 %v886_v46, %v855_v51  ;;  %v902_v62 = vmax.bf16 %v1475_v0, %v894_v54  ;;  %v891_v23 = vadd.bf16 %v876_v59, %v851_v56  ;;  %v898_v18 = vmax.bf16 %v1475_v0, %v890_v19 }
 0x210   : > { %v903_v58 = vmax.bf16 %v1475_v0, %v895_v57  ;;  %v899_v27 = vmax.bf16 %v1475_v0, %v891_v23  ;;  %v1056_v57 = vpop.permute.xlu1 %1055 }
 0x212   : > { %960 = vmatprep.subr.bf16.mxu1 %v903_v58 }
 0x213   : > { %961 = vmatpush1.bf16.msra.mxu1 %v902_v62 }
 0x214   : > { %962 = vmatprep.subr.bf16.mxu1 %v901_v25 }
 0x217   : > { %963 = vmatpush1.bf16.msra.mxu1 %v900_v24  ;;  %v1102_v24 = vpop.permute.xlu0 %1101 }
 0x218   : > { %964 = vmatprep.subr.bf16.mxu1 %v899_v27 }
 0x21b   : > { %965 = vmatpush1.bf16.msra.mxu1 %v898_v18 }
 0x21c   : > { %966 = vmatprep.subr.bf16.mxu1 %v897_v20 }
 0x21f   : > { %967 = vmatpush1.bf16.msra.mxu1 %v896_v29 }
 0x222   : > { %1368 = vmatmul.mubr.msk.bf16.vlgmr.msra.gmra.mxu1 %vm936_vm2, %v1438_v15 }
 0x223   : > { %994 = vmatprep.mubr.bf16.mxu1 %v1475_v0 }
 0x22a   : > { %1369 = vmatmul.mubr.msk.bf16.gmra.mxu1 %vm936_vm2, %v1439_v17 }
 0x22b   : > { %1004 = vmatprep.mubr.bf16.mxu1 %v1475_v0 }
 0x232   : > { %1370 = vmatmul.mubr.msk.bf16.gmra.mxu1 %vm936_vm2, %v1440_v30 }
 0x233   : > { %1014 = vmatprep.mubr.bf16.mxu1 %v1475_v0 }
 0x23a   : > { %1371 = vmatmul.mubr.msk.bf16.gmra.mxu1 %vm936_vm2, %v1441_v31 }
 0x23b   : > { %1024 = vmatprep.mubr.bf16.mxu1 %v1475_v0 }
 0x242   : > { %1372 = vmatmul.mubr.msk.bf16.gmra.mxu1 %vm936_vm2, %v1442_v14  ;;  %v1168_v14 = vlaneseq }
 0x2e2   : > { %v986_v16 = vpop.f32.mrf.mxu1 }
 0x2e4   : > { %v988_v32 = vpop.f32.mrf.mxu1 }
 0x2e6   : > { %v990_v33 = vpop.f32.mrf.mxu1 }
 0x2e7   : > { %v1033_v58 = vpack.c.bf16 %v990_v33, %v986_v16  ;;  %v1169_v16 = vshrl.u32 %v1168_v14, 7 }
 0x2e8   : > { %v992_v34 = vpop.f32.mrf.mxu1 }
 0x2e9   : > { %v1034_v53 = vpack.c.bf16 %v992_v34, %v988_v32  ;;  %v1073_v63 = vadd.bf16 %v1056_v57, %v1033_v58  ;;  %v1170_v34 = vsub.s32 0, %v1169_v16 }
 0x2ea   : > { %v996_v9 = vpop.f32.mrf.mxu1 }
 0x2eb   : > { %v1074_v61 = vadd.bf16 %v1056_v57, %v1034_v53  ;;  %v1081_v26 = vmax.bf16 %v1475_v0, %v1073_v63 }
 0x2ec   : > { %v998_v12 = vpop.f32.mrf.mxu1 }
 0x2ed   : > { %v1082_v25 = vmax.bf16 %v1475_v0, %v1074_v61 }
 0x2ee   : > { %v1000_v13 = vpop.f32.mrf.mxu1 }
 0x2ef   : > { %v1035_v49 = vpack.c.bf16 %v1000_v13, %v996_v9 }
 0x2f0   : > { %v1002_v8 = vpop.f32.mrf.mxu1 }
 0x2f1   : > { %v1036_v43 = vpack.c.bf16 %v1002_v8, %v998_v12  ;;  %v1075_v59 = vadd.bf16 %v1061_v48, %v1035_v49 }
 0x2f2   : > { %v1006_v3 = vpop.f32.mrf.mxu1 }
 0x2f3   : > { %v1076_v54 = vadd.bf16 %v1061_v48, %v1036_v43  ;;  %v1083_v23 = vmax.bf16 %v1475_v0, %v1075_v59 }
 0x2f4   : > { %v1008_v6 = vpop.f32.mrf.mxu1 }
 0x2f5   : > { %v1084_v62 = vmax.bf16 %v1475_v0, %v1076_v54 }
 0x2f6   : > { %v1010_v7 = vpop.f32.mrf.mxu1 }
 0x2f7   : > { %v1037_v40 = vpack.c.bf16 %v1010_v7, %v1006_v3  ;;  %v1093_v7 = vpop.permute.xlu1 %1092 }
 0x2f8   : > { %v1012_v2 = vpop.f32.mrf.mxu1 }
 0x2f9   : > { %v1038_v11 = vpack.c.bf16 %v1012_v2, %v1008_v6  ;;  %v1077_v50 = vadd.bf16 %v1066_v39, %v1037_v40 }
 0x2fa   : > { %v1016_v4 = vpop.f32.mrf.mxu1 }
 0x2fb   : > { %v1078_v44 = vadd.bf16 %v1066_v39, %v1038_v11  ;;  %v1085_v60 = vmax.bf16 %v1475_v0, %v1077_v50 }
 0x2fc   : > { %v1018_v5 = vpop.f32.mrf.mxu1 }
 0x2fd   : > { %v1086_v55 = vmax.bf16 %v1475_v0, %v1078_v44 }
 0x2fe   : > { %v1020_v10 = vpop.f32.mrf.mxu1 }
 0x2ff   : > { %v1039_v35 = vpack.c.bf16 %v1020_v10, %v1016_v4 }
 0x300   : > { %v1022_v37 = vpop.f32.mrf.mxu1 }
 0x301   : > { %v1040_v38 = vpack.c.bf16 %v1022_v37, %v1018_v5  ;;  %v1079_v41 = vadd.bf16 %v1071_v36, %v1039_v35 }
 0x302   : > { %v1827_v42 = vpop.f32.mrf.mxu1 }
 0x303   : > { %v1080_v45 = vadd.bf16 %v1071_v36, %v1040_v38  ;;  %v1087_v51 = vmax.bf16 %v1475_v0, %v1079_v41  ;;  %v1095_v2 = vadd.f32 %v1093_v7, %v1827_v42 }
 0x304   : > { %v1829_v46 = vpop.f32.mrf.mxu1 }
 0x305   : > { %v1088_v47 = vmax.bf16 %v1475_v0, %v1080_v45  ;;  %v1096_v4 = vadd.f32 %v1093_v7, %v1829_v46 }
 0x306   : > { %v1030_v52 = vpop.f32.mrf.mxu1 }
 0x307   : > { %1115 = vmatprep.subr.bf16.mxu0 %v1088_v47 }
 0x308   : > { %1116 = vmatpush1.bf16.msra.mxu0 %v1087_v51  ;;  %v1031_v56 = vpop.f32.mrf.mxu1 }
 0x309   : > { %1117 = vmatprep.subr.bf16.mxu0 %v1086_v55 }
 0x30c   : > { %1118 = vmatpush1.bf16.msra.mxu0 %v1085_v60 }
 0x30d   : > { %1119 = vmatprep.subr.bf16.mxu0 %v1084_v62 }
 0x310   : > { %1120 = vmatpush1.bf16.msra.mxu0 %v1083_v23 }
 0x311   : > { %1121 = vmatprep.subr.bf16.mxu0 %v1082_v25 }
 0x314   : > { %1122 = vmatpush1.bf16.msra.mxu0 %v1081_v26 }
 0x317   : > { %1373 = vmatmul.mubr.msk.bf16.vlgmr.msra.gmra.mxu0 %vm936_vm2, %v1097_v22 }
 0x3d7   : > { %v1141_v19 = vpop.f32.mrf.mxu0 }
 0x3d8   : > { %v1142_v21 = vadd.f32 %v1141_v19, %v1102_v24 }
 0x3d9   : > { %v1143_v27 = vpop.f32.mrf.mxu0 }
 0x3da   : > { %v1374_v28 = vmul.f32 -1.442695, %v1142_v21  ;;  %v1144_v18 = vadd.f32 %v1143_v27, %v1102_v24 }
 0x3db   : > { %v1145_v20 = vpop.f32.mrf.mxu0 }
 0x3dc   : > { %1443 = vpow2.f32 %v1374_v28  ;;  %v1375_v29 = vmul.f32 -1.442695, %v1144_v18 }
 0x3dd   : > { %v1146_v15 = vpop.f32.mrf.mxu0 }
 0x3de   : > { %1445 = vpow2.f32 %v1375_v29 }
 0x3e9   : > { %v1444_v0 = vpop.eup %1443 }
 0x3ea   : > { %v1154_v17 = vadd.f32 1.0, %v1444_v0 }
 0x3eb   : > { %v1446_v30 = vpop.eup %1445 }
 0x3ec   : > { %1447 = vrcp.f32 %v1154_v17  ;;  %v1155_v31 = vadd.f32 1.0, %v1446_v30 }
 0x3ee   : > { %1449 = vrcp.f32 %v1155_v31 }
 0x3f9   : > { %v1448_v32 = vpop.eup %1447 }
 0x3fa   : > { %v1162_v33 = vrot.slane %v1448_v32, 1 }
 0x3fb   : > { %v1450_v9 = vpop.eup %1449 }
 0x3fc   : > { %v1166_v12 = vadd.f32 %v1448_v32, %v1162_v33  ;;  %v1163_v13 = vrot.slane %v1450_v9, 1  ;;  %v1184_v8 = vcombine.low %v1448_v32, %v1450_v9 }
 0x3fe   : > { %v1171_v3 = vrot.slane %v1166_v12, %v1170_v34  ;;  %v1167_v6 = vadd.f32 %v1450_v9, %v1163_v13  ;;  %1376 = vst.sshfl [vmem:[%s421_s23] sm:$0x33 pattern:$0x76325410] %v1184_v8 }
 0x400   : > { %v1175_v5 = vrot.slane %v1167_v6, %v1170_v34  ;;  %v1176_v10 = vmul.f32 %v1171_v3, %v1095_v2 }
 0x402   : > { %v1177_v11 = vmul.f32 %v1175_v5, %v1096_v4 }
 0x404   : > { %v1180_v35 = vcombine.low %v1176_v10, %v1177_v11 }
 0x406   : > { %v1182_v36 = vmul.f32 %v1180_v35, %v1561_v1 }
 0x408   : > { %1183 = vst [vmem:[%s411_s26] sm:$0xff] %v1182_v36 }
 0x409 PF: > { %s21_s15 = sadd.s32 1, %s1473_s15   ;;  %s1875_s13 = smov %s1469_s14 }
 0x40a   : > { %p18_p5 = scmp.ge.s32.totalorder %s21_s15, 4   ;;  %s1876_s14 = smov %s1878_s16 }
 0x40c   :  { %20 = sbr.rel (!%p18_p5) target bundleno = 2 (0x2), region = 98 }

</bundles_post_ra>
